<compile_context>
chip_gen: v6e
topology: v6e:2x2x1
jax: 0.10.0
libtpu: 0.0.40
codegen_flags: <defaults>
</compile_context>

<pallas_src>
import jax
import jax.numpy as jnp
from jax.experimental import pallas as pl
from jax.experimental.pallas import tpu as pltpu

_LANE_W = 512          # lane-dense last dim (multiple of 128) -> unmasked stores
_MAX_TILE_ROWS = 512   # 512x512 f32 tile = 1 MiB; 2 bufs x (in+out) = 4 MiB << 32 MiB


def _identity_kernel(x_ref, o_ref):
    # Whole-tile load + store; pure copy (mem-bound, no VALU/MXU work).
    o_ref[...] = x_ref[...]


def custom_network_forward(x: jax.Array) -> jax.Array:
    """Pallas implementation of CustomNetwork.forward (identity stub)."""
    orig_shape = x.shape
    total = x.size
    itemsize = jnp.dtype(x.dtype).itemsize

    # ---- Lane-dense 2-D view: (rows, _LANE_W), last dim a multiple of 128 ----
    flat = x.reshape(-1)
    rows = pl.cdiv(total, _LANE_W)
    # Rows per grid step: multiple of 8 (sublane), capped for per-generation VMEM.
    tile_rows = min(_MAX_TILE_ROWS, max(8, ((rows + 7) // 8) * 8))
    padded_rows = pl.cdiv(rows, tile_rows) * tile_rows
    padded_total = padded_rows * _LANE_W

    if padded_total != total:
        flat = jnp.pad(flat, (0, padded_total - total))
    x2d = flat.reshape(padded_rows, _LANE_W)

    grid = (padded_rows // tile_rows,)

    out2d = pl.pallas_call(
        _identity_kernel,
        out_shape=jax.ShapeDtypeStruct(x2d.shape, x2d.dtype),
        grid_spec=pltpu.PrefetchScalarGridSpec(
            num_scalar_prefetch=0,
            grid=grid,
            in_specs=[pl.BlockSpec((tile_rows, _LANE_W), lambda i: (i, 0))],
            out_specs=pl.BlockSpec((tile_rows, _LANE_W), lambda i: (i, 0)),
        ),
        compiler_params=pltpu.CompilerParams(
            # Independent row tiles: shard grid across both TensorCores on v7x
            # (no-op on v5e/v6e single-TC chips).
            dimension_semantics=("parallel",),
        ),
        # Identity: output buffer aliases the (padded) input buffer, skipping a
        # separate HBM output allocation / halving HBM traffic when donatable.
        input_output_aliases={0: 0},
        cost_estimate=pl.CostEstimate(
            flops=0,
            transcendentals=0,
            bytes_accessed=2 * padded_total * itemsize,
        ),
    )(x2d)

    return out2d.reshape(-1)[:total].reshape(orig_shape)


if __name__ == "__main__":
    key = jax.random.PRNGKey(0)

    # Small NCHW input consistent with input_nc=3 (single-tile path).
    x = jax.random.normal(key, (2, 3, 16, 16), dtype=jnp.float32)
    y = custom_network_forward(x)
    jax.block_until_ready(y)
    assert y.shape == x.shape and y.dtype == x.dtype
    assert bool(jnp.allclose(y, x)), "identity forward mismatch (small)"

    # Larger input to exercise the multi-step grid / pipelined copy path.
    x_big = jax.random.normal(key, (8, 3, 128, 128), dtype=jnp.float32)
    y_big = custom_network_forward(x_big)
    jax.block_until_ready(y_big)
    assert y_big.shape == x_big.shape and y_big.dtype == x_big.dtype
    assert bool(jnp.allclose(y_big, x_big)), "identity forward mismatch (big)"

    print("KERNEL_OK")
</pallas_src>

<mosaic_0001>
module attributes {stable_mosaic.version = 11 : i64} {
  func.func @_identity_kernel(%arg0: i32, %arg1: memref<8x512xf32, #tpu.memory_space<vmem>>, %arg2: memref<8x512xf32, #tpu.memory_space<vmem>>) attributes {dimension_semantics = [#tpu.dimension_semantics<parallel>], iteration_bounds = array<i64: 1>, scalar_prefetch = 0 : i64, scratch_operands = 0 : i64, tpu.core_type = #tpu.core_type<tc>, window_params = [{transform_indices = @transform_0, window_bounds = array<i64: 8, 512>}, {transform_indices = @transform_1, window_bounds = array<i64: 8, 512>}]} {
    %c0 = arith.constant 0 : index
    %c0_0 = arith.constant 0 : index
    %0 = vector.load %arg1[%c0, %c0_0] : memref<8x512xf32, #tpu.memory_space<vmem>>, vector<8x512xf32>
    %c0_1 = arith.constant 0 : index
    %c0_2 = arith.constant 0 : index
    %1 = vector.load %arg2[%c0_1, %c0_2] : memref<8x512xf32, #tpu.memory_space<vmem>>, vector<8x512xf32>
    tpu.vector_store %arg2[%c0_1, %c0_2], %0 {strides = array<i32>} : memref<8x512xf32, #tpu.memory_space<vmem>>, vector<8x512xf32>,
    return
  }
  func.func @transform_0(%arg0: i32) -> (i32, i32) {
    %c0_i32 = arith.constant 0 : i32
    %c0_i32_0 = arith.constant 0 : i32
    return %arg0, %c0_i32 : i32, i32
  }
  func.func @transform_1(%arg0: i32) -> (i32, i32) {
    %c0_i32 = arith.constant 0 : i32
    %c0_i32_0 = arith.constant 0 : i32
    return %arg0, %c0_i32 : i32, i32
  }
}

</mosaic_0001>

<bundles_post_ra>
// kernel: tpu_custom_call.1
= control target key start
LH: loop header
LB: loop body
LE: loop exit
PB: predicated region body
PF: predicated region fallthrough
CT: control target
= control target key end

     0   :  { %6 = vsyncpa [#allocation3], 0  ;;  %s108_s0 = inlined_call_operand.hbm [shape: f32[8,512], index: 0, kind: input, shape index: {}, may-alias: {0,1}]   ;;  %s109_s1 = inlined_call_operand.hbm [shape: f32[8,512], index: 1, kind: output, shape index: {}, may-alias: {0,1}]  }
   0x1   :  { %7 = vsyncpa [#allocation4], 0  ;;  %s90_s6 = smov [#allocation2]  }
   0x2   :  { %s14_s7 = sshll.u32 %s90_s6, 4  ;;  %s15_s7 = int_to_ptr.vmem [resolvable:$true] %s14_s7 }
   0x3   :  { %s54_s8 = scalar_lea.vmem %s15_s7, 512  ;;  %p59_p1 = scmp.lt.s32.totalorder %s15_s7, %s15_s7 }
   0x4   :  { %p55_p0 = scmp.ne.s32.totalorder %s15_s7, %s54_s8  ;;  %p60_p2 = scmp.lt.s32.totalorder %s54_s8, %s54_s8 }
   0x6   :  { %p61_p3 = por %p60_p2, %p59_p1 }
   0x8   :  { %p62_p4 = pnand %p61_p3, %p55_p0 }
   0xa   :  { %65 = shalt.err (!%p62_p4)
}
   0xb   :  { %17 = dma.hbm_to_vmem [thread:$0]  %s108_s0, 512, %s15_s7, [#allocation3]  }
   0xc   :  { %86 = dma.done.wait [#allocation3], 512  }
   0xd   :  { %87 = vsyncadd [#allocation3], 4294966784  ;;  %s91_s11 = smov [#allocation5]   ;;  %v21_v0 = vld [vmem:[#allocation2] sm:$0xff]  ;;  %v22_v1 = vld [vmem:[#allocation2 + $0x8] sm:$0xff] }
   0xe   :  { %s35_s12 = sshll.u32 %s91_s11, 4  ;;  %v23_v2 = vld [vmem:[#allocation2 + $0x10] sm:$0xff]  ;;  %25 = vst [vmem:[#allocation5] sm:$0xff] %v21_v0  ;;  %26 = vst [vmem:[#allocation5 + $0x8] sm:$0xff] %v22_v1  ;;  %v24_v3 = vld [vmem:[#allocation2 + $0x18] sm:$0xff]  ;;  %s36_s12 = int_to_ptr.vmem [resolvable:$true] %s35_s12 }
   0xf   :  { %27 = vst [vmem:[#allocation5 + $0x10] sm:$0xff] %v23_v2  ;;  %28 = vst [vmem:[#allocation5 + $0x18] sm:$0xff] %v24_v3  ;;  %s66_s13 = scalar_lea.vmem %s36_s12, 512  ;;  %p71_p6 = scmp.lt.s32.totalorder %s36_s12, %s36_s12 }
  0x10   :  { %p67_p5 = scmp.ne.s32.totalorder %s36_s12, %s66_s13  ;;  %p72_p7 = scmp.lt.s32.totalorder %s66_s13, %s66_s13 }
  0x12   :  { %p73_p8 = por %p72_p7, %p71_p6 }
  0x14   :  { %p74_p9 = pnand %p73_p8, %p67_p5 }
  0x16   :  { %77 = shalt.err (!%p74_p9)
}
  0x17   :  { %38 = dma.vmem_to_hbm [thread:$0]  %s36_s12, 512, %s109_s1, [#allocation4]  }
  0x18   :  { %88 = dma.done.wait [#allocation4], 512  }
  0x19   :  { %89 = vsyncadd [#allocation4], 4294966784 }
  0x1a   :  { %42 = vsyncpa [#allocation3], 1 }
  0x1b   :  { %43 = vsyncpa [#allocation4], 1 }

</bundles_post_ra>
